<compile_context>
chip_gen: v5e
topology: v5e:2x2
jax: 0.10.0
libtpu: 0.0.40
codegen_flags: <defaults>
</compile_context>

<pallas_src>
import functools

import jax
import jax.numpy as jnp
from jax.experimental import pallas as pl
from jax.experimental.pallas import tpu as pltpu


def _patch_embed_kernel(p_ref, w_ref, b_ref, o_ref):
    # p_ref: (TM, K) bf16 patch tile, w_ref: (K, E_pad) bf16 projection,
    # b_ref: (1, E_pad) f32 bias.  Accumulate in f32 on the MXU.
    acc = jnp.dot(p_ref[...], w_ref[...], preferred_element_type=jnp.float32)
    o_ref[...] = (acc + b_ref[...]).astype(o_ref.dtype)


def _round_up(x, m):
    return ((x + m - 1) // m) * m


def _pick_tile_m(m, k, e_pad, out_bytes, vmem_budget=12 * 1024 * 1024):
    """Fixed large row tile (multiple of 128) capped by M and a VMEM budget.

    The grid uses pl.cdiv(M, TM); Pallas masks the partial last block, so TM
    does not need to divide M and the patches array is never padded host-side.
    The budget keeps (double-buffered in/out + weights/bias buffers) inside
    v5e's 16 MiB scoped-VMEM default, which also fits v6e/v7x comfortably.
    """
    tm = min(512, max(128, _round_up(m, 128)))

    def footprint(t):
        return (2 * t * k * 2            # bf16 patches, double-buffered
                + 2 * k * e_pad * 2      # bf16 weights (constant block, 2 bufs)
                + 2 * e_pad * 4          # f32 bias
                + 2 * t * e_pad * out_bytes)  # output, double-buffered

    while tm > 128 and footprint(tm) > vmem_budget:
        tm //= 2
    return tm


@functools.partial(jax.jit, static_argnames=("kernel_size", "out_dtype"))
def patch_embed(x, weight, bias, *, kernel_size, out_dtype=None):
    """x: (B, C, H, W) NCHW. weight: (E, C, kh, kw). bias: (E,).

    Returns (B, Hp, Wp, E) — same as PyTorch PatchEmbed.forward output.
    Matmul inputs run in bf16 with f32 accumulation (MXU-native); callers that
    need exact f32-conv numerics should treat this as a bf16-precision op.
    """
    kh, kw = kernel_size
    B, C, H, W = x.shape
    E = weight.shape[0]
    Hp, Wp = H // kh, W // kw
    M = B * Hp * Wp
    K = C * kh * kw
    out_dt = x.dtype if out_dtype is None else jnp.dtype(out_dtype)

    # Patch extraction (exact: stride == kernel, padding == 0).
    # (B, C, Hp, kh, Wp, kw) -> (B, Hp, Wp, C, kh, kw) -> (M, K), bf16 for MXU.
    patches = (
        x.reshape(B, C, Hp, kh, Wp, kw)
        .transpose(0, 2, 4, 1, 3, 5)
        .reshape(M, K)
        .astype(jnp.bfloat16)
    )

    # Conv2d weight (E, C, kh, kw) -> (K, E) so that patches @ w == conv out.
    w_mat = weight.reshape(E, K).T.astype(jnp.bfloat16)
    b_mat = bias.reshape(1, E).astype(jnp.float32)

    # Pad E to a multiple of 128 only when needed (weights/bias only — cheap,
    # done once).  Common ViT embed dims are already 128-aligned, so the usual
    # path has no pad and no post-kernel slice copy.
    E_pad = _round_up(E, 128)
    if E_pad != E:
        w_mat = jnp.pad(w_mat, ((0, 0), (0, E_pad - E)))
        b_mat = jnp.pad(b_mat, ((0, 0), (0, E_pad - E)))

    TM = _pick_tile_m(M, K, E_pad, jnp.dtype(out_dt).itemsize)
    grid_m = pl.cdiv(M, TM)

    out = pl.pallas_call(
        _patch_embed_kernel,
        out_shape=jax.ShapeDtypeStruct((M, E_pad), out_dt),
        grid_spec=pltpu.PrefetchScalarGridSpec(
            num_scalar_prefetch=0,
            grid=(grid_m,),
            in_specs=[
                pl.BlockSpec((TM, K), lambda i: (i, 0)),
                pl.BlockSpec((K, E_pad), lambda i: (0, 0)),
                pl.BlockSpec((1, E_pad), lambda i: (0, 0)),
            ],
            out_specs=pl.BlockSpec((TM, E_pad), lambda i: (i, 0)),
        ),
        compiler_params=pltpu.CompilerParams(
            dimension_semantics=("parallel",),
            # Best-effort: let XLA fuse the patchify producer into the kernel's
            # input DMA for operand 0 if it can (often it cannot for a 6-D
            # transpose — see TODO at top of file).
            allow_input_fusion=[True, False, False],
        ),
    )(patches, w_mat, b_mat)

    if E_pad != E:
        out = out[:, :E]
    return out.reshape(B, Hp, Wp, E)


def _reference(x, weight, bias, kernel_size):
    # Pure-JAX reference at full f32 precision (conv + bias, NHWC output).
    out = jax.lax.conv_general_dilated(
        x,
        weight,
        window_strides=kernel_size,
        padding="VALID",
        dimension_numbers=("NCHW", "OIHW", "NCHW"),
        precision=jax.lax.Precision.HIGHEST,
    )
    out = jnp.transpose(out, (0, 2, 3, 1))
    return out + bias.reshape(1, 1, 1, -1)


if __name__ == "__main__":
    key = jax.random.PRNGKey(0)
    k1, k2, k3 = jax.random.split(key, 3)

    B, C, H, W = 2, 4, 16, 16
    kernel_size = (8, 8)
    embed_dim = 32

    x = jax.random.normal(k1, (B, C, H, W), dtype=jnp.float32)
    weight = (
        jax.random.normal(
            k2, (embed_dim, C, kernel_size[0], kernel_size[1]), dtype=jnp.float32
        )
        * 0.02
    )
    bias = jax.random.normal(k3, (embed_dim,), dtype=jnp.float32) * 0.02

    out = patch_embed(x, weight, bias, kernel_size=kernel_size)
    out = jax.block_until_ready(out)

    ref = _reference(x, weight, bias, kernel_size)
    assert out.shape == (B, H // kernel_size[0], W // kernel_size[1], embed_dim)
    # bf16 MXU inputs with f32 accumulation: tolerance sized for bf16 rounding.
    assert jnp.allclose(out, ref, atol=2e-2, rtol=2e-2), "mismatch vs reference"

    print("KERNEL_OK")
</pallas_src>

<mosaic_0001>
module attributes {stable_mosaic.version = 11 : i64} {
  func.func @_patch_embed_kernel(%arg0: i32, %arg1: memref<128x256xbf16, #tpu.memory_space<vmem>>, %arg2: memref<256x128xbf16, #tpu.memory_space<vmem>>, %arg3: memref<1x128xf32, #tpu.memory_space<vmem>>, %arg4: memref<128x128xf32, #tpu.memory_space<vmem>>) attributes {dimension_semantics = [#tpu.dimension_semantics<parallel>], iteration_bounds = array<i64: 1>, scalar_prefetch = 0 : i64, scratch_operands = 0 : i64, tpu.core_type = #tpu.core_type<tc>, window_params = [{transform_indices = @transform_0, window_bounds = array<i64: 128, 256>}, {pipeline_mode = #tpu.pipeline_mode<synchronous>, transform_indices = @transform_1, window_bounds = array<i64: 256, 128>}, {pipeline_mode = #tpu.pipeline_mode<synchronous>, transform_indices = @transform_2, window_bounds = array<i64: 1, 128>}, {transform_indices = @transform_3, window_bounds = array<i64: 128, 128>}]} {
    %c0 = arith.constant 0 : index
    %c0_0 = arith.constant 0 : index
    %0 = vector.load %arg1[%c0, %c0_0] : memref<128x256xbf16, #tpu.memory_space<vmem>>, vector<128x256xbf16>
    %c0_1 = arith.constant 0 : index
    %c0_2 = arith.constant 0 : index
    %1 = vector.load %arg2[%c0_1, %c0_2] : memref<256x128xbf16, #tpu.memory_space<vmem>>, vector<256x128xbf16>
    %cst = arith.constant dense<0.000000e+00> : vector<128x128xf32>
    %2 = tpu.matmul %0, %1, %cst {dimension_numbers = #tpu.dot_dimension_numbers<[1], [0], [0], [1], [0, 0, 1, 1], [], []>} : vector<128x256xbf16>, vector<256x128xbf16>, vector<128x128xf32> -> vector<128x128xf32>
    %c0_3 = arith.constant 0 : index
    %c0_4 = arith.constant 0 : index
    %3 = vector.load %arg3[%c0_3, %c0_4] : memref<1x128xf32, #tpu.memory_space<vmem>>, vector<1x128xf32>
    %4 = vector.broadcast %3 : vector<1x128xf32> to vector<128x128xf32>
    %5 = arith.addf %2, %4 : vector<128x128xf32>
    %c0_5 = arith.constant 0 : index
    %c0_6 = arith.constant 0 : index
    %6 = vector.load %arg4[%c0_5, %c0_6] : memref<128x128xf32, #tpu.memory_space<vmem>>, vector<128x128xf32>
    tpu.vector_store %arg4[%c0_5, %c0_6], %5 {strides = array<i32>} : memref<128x128xf32, #tpu.memory_space<vmem>>, vector<128x128xf32>,
    return
  }
  func.func @transform_0(%arg0: i32) -> (i32, i32) {
    %c0_i32 = arith.constant 0 : i32
    %c0_i32_0 = arith.constant 0 : i32
    return %arg0, %c0_i32 : i32, i32
  }
  func.func @transform_1(%arg0: i32) -> (i32, i32) {
    %c0_i32 = arith.constant 0 : i32
    %c0_i32_0 = arith.constant 0 : i32
    %c0_i32_1 = arith.constant 0 : i32
    return %c0_i32, %c0_i32_0 : i32, i32
  }
  func.func @transform_2(%arg0: i32) -> (i32, i32) {
    %c0_i32 = arith.constant 0 : i32
    %c0_i32_0 = arith.constant 0 : i32
    %c0_i32_1 = arith.constant 0 : i32
    return %c0_i32, %c0_i32_0 : i32, i32
  }
  func.func @transform_3(%arg0: i32) -> (i32, i32) {
    %c0_i32 = arith.constant 0 : i32
    %c0_i32_0 = arith.constant 0 : i32
    return %arg0, %c0_i32 : i32, i32
  }
}

</mosaic_0001>

<bundles_post_ra>
// kernel: patch_embed.1
= control target key start
LH: loop header
LB: loop body
LE: loop exit
PB: predicated region body
PF: predicated region fallthrough
CT: control target
= control target key end

     0   :  { %8 = vsyncpa [#allocation3], 0  ;;  %s772_s0 = inlined_call_operand.vmem [shape: bf16[8,256], index: 0, kind: input, shape index: {}]   ;;  %s773_s1 = inlined_call_operand.vmem [shape: bf16[256,128], index: 1, kind: input, shape index: {}]   ;;  %s774_s2 = inlined_call_operand.vmem [shape: f32[1,128], index: 2, kind: input, shape index: {}]   ;;  %s775_s3 = inlined_call_operand.hbm [shape: f32[8,128], index: 3, kind: output, shape index: {}]  }
   0x1   :  { %v526_v0 = vld [vmem:[%s773_s1 + $0x38] sm:$0xff]  ;;  %v525_v2 = vld [vmem:[%s773_s1 + $0x30] sm:$0xff]  ;;  %v524_v4 = vld [vmem:[%s773_s1 + $0x28] sm:$0xff] }
   0x2   :  { %v534_v1 = vld [vmem:[%s773_s1 + $0x78] sm:$0xff]  ;;  %243 = vmatpush.bf16.msra.mxu0 %v526_v0  ;;  %535 = vmatpush.bf16.msra.mxu2 %v526_v0  ;;  %v533_v3 = vld [vmem:[%s773_s1 + $0x70] sm:$0xff]  ;;  %v532_v5 = vld [vmem:[%s773_s1 + $0x68] sm:$0xff] }
   0x3   :  { %292 = vmatpush.bf16.msra.mxu1 %v534_v1  ;;  %543 = vmatpush.bf16.msra.mxu3 %v534_v1  ;;  %v523_v6 = vld [vmem:[%s773_s1 + $0x20] sm:$0xff]  ;;  %v522_v8 = vld [vmem:[%s773_s1 + $0x18] sm:$0xff]  ;;  %v521_v10 = vld [vmem:[%s773_s1 + $0x10] sm:$0xff] }
   0x4   :  { %v531_v7 = vld [vmem:[%s773_s1 + $0x60] sm:$0xff]  ;;  %v530_v9 = vld [vmem:[%s773_s1 + $0x58] sm:$0xff]  ;;  %v529_v11 = vld [vmem:[%s773_s1 + $0x50] sm:$0xff] }
   0x5   :  { %v520_v12 = vld [vmem:[%s773_s1 + $0x8] sm:$0xff]  ;;  %v519_v14 = vld [vmem:[%s773_s1] sm:$0xff]  ;;  %v385_v28 = vld [vmem:[%s772_s0 + $0x10] sm:$0xf] }
   0x6   :  { %244 = vmatpush.bf16.msra.mxu0 %v525_v2  ;;  %536 = vmatpush.bf16.msra.mxu2 %v525_v2  ;;  %v528_v13 = vld [vmem:[%s773_s1 + $0x48] sm:$0xff]  ;;  %v527_v15 = vld [vmem:[%s773_s1 + $0x40] sm:$0xff]  ;;  %v506_v29 = vld [vmem:[%s772_s0 + $0x14] sm:$0xf0] }
   0x7   :  { %293 = vmatpush.bf16.msra.mxu1 %v533_v3  ;;  %544 = vmatpush.bf16.msra.mxu3 %v533_v3  ;;  %v377_v16 = vld [vmem:[%s772_s0] sm:$0xf]  ;;  %v504_v17 = vld [vmem:[%s772_s0 + $0x4] sm:$0xf0]  ;;  %v503_v20 = vld [vmem:[%s772_s0 + $0x4] sm:$0xf]  ;;  %v386_v36 = vor.u32 %v506_v29, %v385_v28 }
   0x8   :  { %v409_v18 = vld [vmem:[%s772_s0 + $0x40] sm:$0xf]  ;;  %v512_v19 = vld [vmem:[%s772_s0 + $0x44] sm:$0xf0]  ;;  %v379_v21 = vld [vmem:[%s772_s0 + $0x8] sm:$0xf0]  ;;  %v378_v24 = vor.u32 %v504_v17, %v377_v16 }
   0x9   :  { %v511_v22 = vld [vmem:[%s772_s0 + $0x44] sm:$0xf]  ;;  %v411_v23 = vld [vmem:[%s772_s0 + $0x48] sm:$0xf0]  ;;  %v410_v25 = vor.u32 %v512_v19, %v409_v18  ;;  %v382_v26 = vor.u32 %v503_v20, %v379_v21  ;;  %v417_v30 = vld [vmem:[%s772_s0 + $0x50] sm:$0xf] }
   0xa   :  { %245 = vmatpush.bf16.msra.mxu0 %v524_v4  ;;  %537 = vmatpush.bf16.msra.mxu2 %v524_v4  ;;  %v414_v27 = vor.u32 %v511_v22, %v411_v23  ;;  %v514_v31 = vld [vmem:[%s772_s0 + $0x54] sm:$0xf0]  ;;  %v505_v32 = vld [vmem:[%s772_s0 + $0x14] sm:$0xf]  ;;  %v387_v33 = vld [vmem:[%s772_s0 + $0x18] sm:$0xf0] }
   0xb   :  { %294 = vmatpush.bf16.msra.mxu1 %v532_v5  ;;  %545 = vmatpush.bf16.msra.mxu3 %v532_v5  ;;  %v513_v34 = vld [vmem:[%s772_s0 + $0x54] sm:$0xf]  ;;  %v419_v35 = vld [vmem:[%s772_s0 + $0x58] sm:$0xf0]  ;;  %v418_v37 = vor.u32 %v514_v31, %v417_v30  ;;  %v390_v38 = vor.u32 %v505_v32, %v387_v33  ;;  %v393_v40 = vld [vmem:[%s772_s0 + $0x20] sm:$0xf] }
   0xc   :  { %v422_v39 = vor.u32 %v513_v34, %v419_v35  ;;  %v508_v41 = vld [vmem:[%s772_s0 + $0x24] sm:$0xf0]  ;;  %v425_v42 = vld [vmem:[%s772_s0 + $0x60] sm:$0xf]  ;;  %v507_v44 = vld [vmem:[%s772_s0 + $0x24] sm:$0xf] }
   0xd   :  { %v516_v43 = vld [vmem:[%s772_s0 + $0x64] sm:$0xf0]  ;;  %v395_v45 = vld [vmem:[%s772_s0 + $0x28] sm:$0xf0]  ;;  %v515_v46 = vld [vmem:[%s772_s0 + $0x64] sm:$0xf]  ;;  %v394_v48 = vor.u32 %v508_v41, %v393_v40 }
   0xe   :  { %246 = vmatpush.bf16.msra.mxu0 %v523_v6  ;;  %538 = vmatpush.bf16.msra.mxu2 %v523_v6  ;;  %v427_v47 = vld [vmem:[%s772_s0 + $0x68] sm:$0xf0]  ;;  %v426_v49 = vor.u32 %v516_v43, %v425_v42  ;;  %v398_v50 = vor.u32 %v507_v44, %v395_v45  ;;  %v401_v52 = vld [vmem:[%s772_s0 + $0x30] sm:$0xf]  ;;  %v510_v53 = vld [vmem:[%s772_s0 + $0x34] sm:$0xf0] }
   0xf   :  { %295 = vmatpush.bf16.msra.mxu1 %v531_v7  ;;  %546 = vmatpush.bf16.msra.mxu3 %v531_v7  ;;  %v430_v51 = vor.u32 %v515_v46, %v427_v47  ;;  %v433_v54 = vld [vmem:[%s772_s0 + $0x70] sm:$0xf]  ;;  %v518_v55 = vld [vmem:[%s772_s0 + $0x74] sm:$0xf0]  ;;  %v509_v56 = vld [vmem:[%s772_s0 + $0x34] sm:$0xf]  ;;  %v402_v60 = vor.u32 %v510_v53, %v401_v52 }
  0x10   :  { %v403_v57 = vld [vmem:[%s772_s0 + $0x38] sm:$0xf0]  ;;  %v517_v58 = vld [vmem:[%s772_s0 + $0x74] sm:$0xf]  ;;  %v434_v61 = vor.u32 %v518_v55, %v433_v54  ;;  %v751_v0 = vld [vmem:[%s774_s2] ss:$0 sm:$0xff] }
  0x11   :  { %v435_v59 = vld [vmem:[%s772_s0 + $0x78] sm:$0xf0]  ;;  %v406_v62 = vor.u32 %v509_v56, %v403_v57 }
  0x12   :  { %247 = vmatpush.bf16.msra.mxu0 %v522_v8  ;;  %539 = vmatpush.bf16.msra.mxu2 %v522_v8  ;;  %v438_v63 = vor.u32 %v517_v58, %v435_v59 }
  0x13   :  { %296 = vmatpush.bf16.msra.mxu1 %v530_v9  ;;  %547 = vmatpush.bf16.msra.mxu3 %v530_v9 }
  0x16   :  { %248 = vmatpush.bf16.msra.mxu0 %v521_v10  ;;  %540 = vmatpush.bf16.msra.mxu2 %v521_v10 }
  0x17   :  { %297 = vmatpush.bf16.msra.mxu1 %v529_v11  ;;  %548 = vmatpush.bf16.msra.mxu3 %v529_v11 }
  0x1a   :  { %249 = vmatpush.bf16.msra.mxu0 %v520_v12  ;;  %541 = vmatpush.bf16.msra.mxu2 %v520_v12 }
  0x1b   :  { %298 = vmatpush.bf16.msra.mxu1 %v528_v13  ;;  %549 = vmatpush.bf16.msra.mxu3 %v528_v13 }
  0x1e   :  { %250 = vmatpush.bf16.msra.mxu0 %v519_v14  ;;  %542 = vmatpush.bf16.msra.mxu2 %v519_v14 }
  0x1f   :  { %299 = vmatpush.bf16.msra.mxu1 %v527_v15  ;;  %550 = vmatpush.bf16.msra.mxu3 %v527_v15 }
  0x21   :  { %251 = vmatmul.bf16.vlgmr.msra.gmra.mxu0 %v378_v24  ;;  %271 = vmatmul.bf16.vlgmr.msra.gmra.mxu2 %v410_v25 }
  0x22   :  { %300 = vmatmul.bf16.vlgmr.msra.gmra.mxu1 %v382_v26  ;;  %320 = vmatmul.bf16.vlgmr.msra.gmra.mxu3 %v414_v27 }
  0x31   :  { %256 = vmatmul.bf16.gmra.mxu0 %v386_v36  ;;  %276 = vmatmul.bf16.gmra.mxu2 %v418_v37 }
  0x32   :  { %305 = vmatmul.bf16.gmra.mxu1 %v390_v38  ;;  %325 = vmatmul.bf16.gmra.mxu3 %v422_v39 }
  0x41   :  { %261 = vmatmul.bf16.gmra.mxu0 %v394_v48  ;;  %281 = vmatmul.bf16.gmra.mxu2 %v426_v49 }
  0x42   :  { %310 = vmatmul.bf16.gmra.mxu1 %v398_v50  ;;  %330 = vmatmul.bf16.gmra.mxu3 %v430_v51 }
  0x51   :  { %266 = vmatmul.bf16.gmra.mxu0 %v402_v60  ;;  %286 = vmatmul.bf16.gmra.mxu2 %v434_v61 }
  0x52   :  { %315 = vmatmul.bf16.gmra.mxu1 %v406_v62  ;;  %335 = vmatmul.bf16.gmra.mxu3 %v438_v63 }
  0x9e   :  { %v252_v1 = vpop.f32.mrf.mxu0 }
  0x9f   :  { %v253_v2 = vadd.f32 %v751_v0, %v252_v1  ;;  %v301_v3 = vpop.f32.mrf.mxu1 }
  0xa1   :  { %v302_v4 = vadd.f32 %v301_v3, %v253_v2 }
  0xa3   :  { %341 = vst [vmem:[#allocation2] sm:$0xff] %v302_v4 }
  0xa4   :  { %v272_v5 = vpop.f32.mrf.mxu2 }
  0xa5   :  { %v273_v6 = vadd.f32 %v751_v0, %v272_v5  ;;  %v321_v7 = vpop.f32.mrf.mxu3 }
  0xa6   :  { %v254_v8 = vpop.f32.mrf.mxu0 }
  0xa7   :  { %v322_v9 = vadd.f32 %v321_v7, %v273_v6  ;;  %v255_v10 = vadd.f32 %v751_v0, %v254_v8  ;;  %v303_v11 = vpop.f32.mrf.mxu1 }
  0xa9   :  { %349 = vst [vmem:[#allocation2 + $0x40] sm:$0xff] %v322_v9  ;;  %v304_v12 = vadd.f32 %v303_v11, %v255_v10 }
  0xab   :  { %342 = vst [vmem:[#allocation2 + $0x8] sm:$0xff] %v304_v12 }
  0xac   :  { %v274_v13 = vpop.f32.mrf.mxu2 }
  0xad   :  { %v275_v14 = vadd.f32 %v751_v0, %v274_v13  ;;  %v323_v15 = vpop.f32.mrf.mxu3 }
  0xae   :  { %v257_v16 = vpop.f32.mrf.mxu0 }
  0xaf   :  { %v324_v17 = vadd.f32 %v323_v15, %v275_v14  ;;  %v258_v18 = vadd.f32 %v751_v0, %v257_v16  ;;  %v306_v19 = vpop.f32.mrf.mxu1 }
  0xb1   :  { %350 = vst [vmem:[#allocation2 + $0x48] sm:$0xff] %v324_v17  ;;  %v307_v20 = vadd.f32 %v306_v19, %v258_v18 }
  0xb3   :  { %343 = vst [vmem:[#allocation2 + $0x10] sm:$0xff] %v307_v20 }
  0xb4   :  { %v277_v21 = vpop.f32.mrf.mxu2 }
  0xb5   :  { %v278_v22 = vadd.f32 %v751_v0, %v277_v21  ;;  %v326_v23 = vpop.f32.mrf.mxu3 }
  0xb6   :  { %v259_v24 = vpop.f32.mrf.mxu0 }
  0xb7   :  { %v327_v25 = vadd.f32 %v326_v23, %v278_v22  ;;  %v260_v26 = vadd.f32 %v751_v0, %v259_v24  ;;  %v308_v27 = vpop.f32.mrf.mxu1 }
  0xb9   :  { %351 = vst [vmem:[#allocation2 + $0x50] sm:$0xff] %v327_v25  ;;  %v309_v28 = vadd.f32 %v308_v27, %v260_v26 }
  0xbb   :  { %344 = vst [vmem:[#allocation2 + $0x18] sm:$0xff] %v309_v28 }
  0xbc   :  { %v279_v29 = vpop.f32.mrf.mxu2 }
  0xbd   :  { %v280_v30 = vadd.f32 %v751_v0, %v279_v29  ;;  %v328_v31 = vpop.f32.mrf.mxu3 }
  0xbe   :  { %v262_v32 = vpop.f32.mrf.mxu0 }
  0xbf   :  { %v329_v33 = vadd.f32 %v328_v31, %v280_v30  ;;  %v263_v34 = vadd.f32 %v751_v0, %v262_v32  ;;  %v311_v35 = vpop.f32.mrf.mxu1 }
  0xc1   :  { %352 = vst [vmem:[#allocation2 + $0x58] sm:$0xff] %v329_v33  ;;  %v312_v36 = vadd.f32 %v311_v35, %v263_v34 }
  0xc3   :  { %345 = vst [vmem:[#allocation2 + $0x20] sm:$0xff] %v312_v36 }
  0xc4   :  { %v282_v37 = vpop.f32.mrf.mxu2 }
  0xc5   :  { %v283_v38 = vadd.f32 %v751_v0, %v282_v37  ;;  %v331_v39 = vpop.f32.mrf.mxu3 }
  0xc6   :  { %v264_v40 = vpop.f32.mrf.mxu0 }
  0xc7   :  { %v332_v41 = vadd.f32 %v331_v39, %v283_v38  ;;  %v265_v42 = vadd.f32 %v751_v0, %v264_v40  ;;  %v313_v43 = vpop.f32.mrf.mxu1 }
  0xc9   :  { %353 = vst [vmem:[#allocation2 + $0x60] sm:$0xff] %v332_v41  ;;  %v314_v44 = vadd.f32 %v313_v43, %v265_v42 }
  0xcb   :  { %346 = vst [vmem:[#allocation2 + $0x28] sm:$0xff] %v314_v44 }
  0xcc   :  { %v284_v45 = vpop.f32.mrf.mxu2 }
  0xcd   :  { %v285_v46 = vadd.f32 %v751_v0, %v284_v45  ;;  %v333_v47 = vpop.f32.mrf.mxu3 }
  0xce   :  { %v267_v48 = vpop.f32.mrf.mxu0 }
  0xcf   :  { %v334_v49 = vadd.f32 %v333_v47, %v285_v46  ;;  %v268_v50 = vadd.f32 %v751_v0, %v267_v48  ;;  %v316_v51 = vpop.f32.mrf.mxu1 }
  0xd1   :  { %354 = vst [vmem:[#allocation2 + $0x68] sm:$0xff] %v334_v49  ;;  %v317_v52 = vadd.f32 %v316_v51, %v268_v50 }
  0xd3   :  { %347 = vst [vmem:[#allocation2 + $0x30] sm:$0xff] %v317_v52 }
  0xd4   :  { %v287_v53 = vpop.f32.mrf.mxu2 }
  0xd5   :  { %v288_v54 = vadd.f32 %v751_v0, %v287_v53  ;;  %v336_v55 = vpop.f32.mrf.mxu3 }
  0xd6   :  { %v269_v56 = vpop.f32.mrf.mxu0 }
  0xd7   :  { %v337_v57 = vadd.f32 %v336_v55, %v288_v54  ;;  %v270_v58 = vadd.f32 %v751_v0, %v269_v56  ;;  %v318_v59 = vpop.f32.mrf.mxu1 }
  0xd9   :  { %355 = vst [vmem:[#allocation2 + $0x70] sm:$0xff] %v337_v57  ;;  %v319_v60 = vadd.f32 %v318_v59, %v270_v58 }
  0xdb   :  { %348 = vst [vmem:[#allocation2 + $0x38] sm:$0xff] %v319_v60 }
  0xdc   :  { %v289_v61 = vpop.f32.mrf.mxu2 }
  0xdd   :  { %v290_v62 = vadd.f32 %v751_v0, %v289_v61  ;;  %v338_v63 = vpop.f32.mrf.mxu3 }
  0xdf   :  { %v339_v1 = vadd.f32 %v338_v63, %v290_v62 }
  0xe1   :  { %356 = vst [vmem:[#allocation2 + $0x78] sm:$0xff] %v339_v1 }
  0xe2   :  { %360 = vsyncadd [#allocation3], 1920  ;;  %s363_s26 = sshll.u32 %s775_s3, 4  ;;  %s581_s27 = smov [#allocation2]   ;;  %s364_s26 = int_to_ptr.hbm [resolvable:$true] %s363_s26 }
  0xe3   :  { %s361_s28 = sshll.u32 %s581_s27, 4  ;;  %s582_s29 = smov 128   ;;  %s362_s28 = int_to_ptr.vmem [resolvable:$true] %s361_s28 }
  0xe4   :  { %s583_s30 = smov 8  }
  0xe5   :  { %369 = dma.vmem_to_hbm [thread:$0]  %s362_s28, 128, %s364_s26, [#allocation3], %s582_s29, %s582_s29, %s583_s30  }
  0xe6   :  { %579 = dma.done.wait [#allocation3], 2048  }
  0xe7   :  { %580 = vsyncadd [#allocation3], 4294965248 }
  0xe8   :  { %374 = vsyncpa [#allocation3], 1 }

</bundles_post_ra>
